<compile_context>
chip_gen: v7x
topology: tpu7x:2x2x1
jax: 0.10.0
libtpu: 0.0.40
codegen_flags: <defaults>
</compile_context>

<pallas_src>
import functools

import jax
import jax.numpy as jnp
from jax.experimental import pallas as pl
from jax.experimental.pallas import tpu as pltpu


def _round_up(n, m):
    return ((n + m - 1) // m) * m


def highnet_kernel(x_ref, w1_ref, b1_ref, wt_ref, bt_ref, wh_ref, bh_ref,
                   w2_ref, b2_ref, o_ref):
    # x / weights arrive as bf16 (native MXU path); accumulate in f32.
    x = x_ref[...]

    h0 = jnp.dot(x, w1_ref[...], preferred_element_type=jnp.float32) + b1_ref[...]
    h0 = jnp.maximum(h0, 0.0)
    h0_b = h0.astype(jnp.bfloat16)

    t_pre = jnp.dot(h0_b, wt_ref[...], preferred_element_type=jnp.float32) + bt_ref[...]
    h_pre = jnp.dot(h0_b, wh_ref[...], preferred_element_type=jnp.float32) + bh_ref[...]

    # sigmoid(z) = 0.5*tanh(0.5*z) + 0.5 : one EUP op per element instead of exp + divide.
    T = 0.5 * jnp.tanh(0.5 * t_pre) + 0.5
    H = 0.5 * jnp.tanh(0.5 * h_pre) + 0.5

    # Highway combine: H*T + h0*(1-T) == h0 + T*(H - h0)  (fewer VPU ops, one less live value).
    hl = h0 + T * (H - h0)

    y = jnp.dot(hl.astype(jnp.bfloat16), w2_ref[...],
                preferred_element_type=jnp.float32) + b2_ref[...]
    o_ref[...] = y.astype(o_ref.dtype)


def high_network_forward(x, params, *, batch_tile=None, lane_pad=128):
    """x: (B, input_len) float32. params: dict of pre-transposed f32 weights/biases.

    Weights are stored (in_features, out_features); biases (1, out_features)."""
    B, input_len = x.shape
    w1, b1 = params["w1"], params["b1"]      # (input_len, midlen), (1, midlen)
    wt, bt = params["wt"], params["bt"]      # (midlen, midlen),    (1, midlen)
    wh, bh = params["wh"], params["bh"]      # (midlen, midlen),    (1, midlen)
    w2, b2 = params["w2"], params["b2"]      # (midlen, labels),    (1, labels)
    midlen = w1.shape[1]
    labels = w2.shape[1]

    # Lane-dense feature dims (multiples of 128) for the MXU and unmasked output stores.
    midlen_p = _round_up(midlen, lane_pad)
    labels_p = _round_up(labels, lane_pad)

    # Batch tile: multiple of 8 (sublane rule); pad batch up to a multiple of the tile.
    if batch_tile is None:
        batch_tile = min(_round_up(B, 8), 512)
    tb = max(8, _round_up(batch_tile, 8))
    B_pad = _round_up(B, tb)
    grid = (B_pad // tb,)

    def pad_to(a, rows, cols, dtype):
        a = a.astype(dtype)
        return jnp.pad(a, ((0, rows - a.shape[0]), (0, cols - a.shape[1])))

    # Zero padding is exact: padded h0 lanes are relu(0)=0 and padded w2 rows are 0,
    # so padded lanes never leak into the real (sliced) outputs.
    xp  = pad_to(x,  B_pad,     input_len, jnp.bfloat16)
    w1p = pad_to(w1, input_len, midlen_p,  jnp.bfloat16)
    wtp = pad_to(wt, midlen_p,  midlen_p,  jnp.bfloat16)
    whp = pad_to(wh, midlen_p,  midlen_p,  jnp.bfloat16)
    w2p = pad_to(w2, midlen_p,  labels_p,  jnp.bfloat16)
    b1p = pad_to(b1, 1, midlen_p, jnp.float32)
    btp = pad_to(bt, 1, midlen_p, jnp.float32)
    bhp = pad_to(bh, 1, midlen_p, jnp.float32)
    b2p = pad_to(b2, 1, labels_p, jnp.float32)

    def wspec(shape):
        # Grid-invariant weight/bias block (index_map constant across the batch grid).
        return pl.BlockSpec(shape, lambda i: (0, 0))

    # Advisory cost estimate for the XLA scheduler.
    flops = 2 * B_pad * (input_len * midlen_p + 2 * midlen_p * midlen_p
                         + midlen_p * labels_p)
    transcendentals = 2 * B_pad * midlen_p
    bytes_accessed = (xp.size * 2
                      + (w1p.size + wtp.size + whp.size + w2p.size) * 2
                      + (b1p.size + btp.size + bhp.size + b2p.size) * 4
                      + B_pad * labels_p * 4)

    # VMEM budget: double-buffered inputs/outputs + f32 intermediates, clamped to
    # 64 MiB (v7x physical VMEM).
    # TODO(synk): for very large midlen (>= ~2048) add a K-tiling grid axis over midlen
    # with a f32 VMEM accumulator instead of keeping full midlen x midlen weights resident.
    w_bytes = (w1p.size + wtp.size + whp.size + w2p.size) * 2
    b_bytes = (b1p.size + btp.size + bhp.size + b2p.size) * 4
    tile_bytes = tb * input_len * 2 + tb * labels_p * 4
    interm_bytes = 4 * tb * midlen_p * 4
    vmem_limit = int(min(max(2 * (w_bytes + b_bytes + tile_bytes) + interm_bytes
                             + (8 << 20), 16 << 20), 64 << 20))

    out = pl.pallas_call(
        highnet_kernel,
        out_shape=jax.ShapeDtypeStruct((B_pad, labels_p), jnp.float32),
        grid_spec=pltpu.PrefetchScalarGridSpec(
            num_scalar_prefetch=0,
            grid=grid,
            in_specs=[
                pl.BlockSpec((tb, input_len), lambda i: (i, 0)),   # x (batch-tiled)
                wspec((input_len, midlen_p)),                      # w1
                wspec((1, midlen_p)),                              # b1
                wspec((midlen_p, midlen_p)),                       # wt
                wspec((1, midlen_p)),                              # bt
                wspec((midlen_p, midlen_p)),                       # wh
                wspec((1, midlen_p)),                              # bh
                wspec((midlen_p, labels_p)),                       # w2
                wspec((1, labels_p)),                              # b2
            ],
            out_specs=pl.BlockSpec((tb, labels_p), lambda i: (i, 0)),
        ),
        compiler_params=pltpu.CompilerParams(
            dimension_semantics=("parallel",),
            vmem_limit_bytes=vmem_limit),
        cost_estimate=pl.CostEstimate(
            flops=flops,
            transcendentals=transcendentals,
            bytes_accessed=bytes_accessed),
    )(xp, w1p, b1p, wtp, btp, whp, bhp, w2p, b2p)

    return out[:B, :labels]


def init_params(key, input_len, midlen, labels_size):
    """Deterministic init mimicking PyTorch Linear default (uniform +/- 1/sqrt(fan_in)).

    Weights are stored pre-transposed as (in_features, out_features), f32."""
    def linear(key, fan_in, fan_out):
        kw, kb = jax.random.split(key)
        bound = 1.0 / jnp.sqrt(fan_in)
        w = jax.random.uniform(kw, (fan_in, fan_out), jnp.float32, -bound, bound)
        b = jax.random.uniform(kb, (1, fan_out), jnp.float32, -bound, bound)
        return w, b

    k1, k2, k3, k4 = jax.random.split(key, 4)
    w1, b1 = linear(k1, input_len, midlen)    # self.lin
    wt, bt = linear(k2, midlen, midlen)       # self.high.t
    wh, bh = linear(k3, midlen, midlen)       # self.high.h
    w2, b2 = linear(k4, midlen, labels_size)  # self.lin2
    return dict(w1=w1, b1=b1, wt=wt, bt=bt, wh=wh, bh=bh, w2=w2, b2=b2)


def high_network_ref(x, p):
    """Pure-JAX f32 reference for correctness checking."""
    h0 = jnp.maximum(x @ p["w1"] + p["b1"], 0.0)
    T = jax.nn.sigmoid(h0 @ p["wt"] + p["bt"])
    H = jax.nn.sigmoid(h0 @ p["wh"] + p["bh"])
    hl = H * T + h0 * (1.0 - T)
    return hl @ p["w2"] + p["b2"]


if __name__ == "__main__":
    key = jax.random.PRNGKey(0)
    kx, kp = jax.random.split(key)

    batch = 256
    input_len = 32
    midlen = 64
    labels_size = 16

    x = jax.random.normal(kx, (batch, input_len), jnp.float32)
    params = init_params(kp, input_len, midlen, labels_size)

    # batch_tile=128 -> 2-step grid: exercises the batch pipeline (and both v7x TCs).
    fwd = jax.jit(functools.partial(high_network_forward, batch_tile=128))
    out = fwd(x, params)
    jax.block_until_ready(out)

    ref = high_network_ref(x, params)
    assert out.shape == (batch, labels_size)
    max_err = float(jnp.max(jnp.abs(out - ref)))
    # bf16 MXU operands with f32 accumulation: expect ~1e-2 absolute error at these scales.
    assert max_err < 5e-2, f"max abs err {max_err}"

    print("KERNEL_OK")
</pallas_src>

<mosaic_0001>
module attributes {stable_mosaic.version = 11 : i64} {
  func.func @highnet_kernel(%arg0: i32, %arg1: memref<128x32xbf16, #tpu.memory_space<vmem>>, %arg2: memref<32x128xbf16, #tpu.memory_space<vmem>>, %arg3: memref<1x128xf32, #tpu.memory_space<vmem>>, %arg4: memref<128x128xbf16, #tpu.memory_space<vmem>>, %arg5: memref<1x128xf32, #tpu.memory_space<vmem>>, %arg6: memref<128x128xbf16, #tpu.memory_space<vmem>>, %arg7: memref<1x128xf32, #tpu.memory_space<vmem>>, %arg8: memref<128x128xbf16, #tpu.memory_space<vmem>>, %arg9: memref<1x128xf32, #tpu.memory_space<vmem>>, %arg10: memref<128x128xf32, #tpu.memory_space<vmem>>) attributes {dimension_semantics = [#tpu.dimension_semantics<parallel>], iteration_bounds = array<i64: 2>, scalar_prefetch = 0 : i64, scratch_operands = 0 : i64, tpu.core_type = #tpu.core_type<tc>, window_params = [{transform_indices = @transform_0, window_bounds = array<i64: 128, 32>}, {pipeline_mode = #tpu.pipeline_mode<synchronous>, transform_indices = @transform_1, window_bounds = array<i64: 32, 128>}, {pipeline_mode = #tpu.pipeline_mode<synchronous>, transform_indices = @transform_2, window_bounds = array<i64: 1, 128>}, {pipeline_mode = #tpu.pipeline_mode<synchronous>, transform_indices = @transform_3, window_bounds = array<i64: 128, 128>}, {pipeline_mode = #tpu.pipeline_mode<synchronous>, transform_indices = @transform_4, window_bounds = array<i64: 1, 128>}, {pipeline_mode = #tpu.pipeline_mode<synchronous>, transform_indices = @transform_5, window_bounds = array<i64: 128, 128>}, {pipeline_mode = #tpu.pipeline_mode<synchronous>, transform_indices = @transform_6, window_bounds = array<i64: 1, 128>}, {pipeline_mode = #tpu.pipeline_mode<synchronous>, transform_indices = @transform_7, window_bounds = array<i64: 128, 128>}, {pipeline_mode = #tpu.pipeline_mode<synchronous>, transform_indices = @transform_8, window_bounds = array<i64: 1, 128>}, {transform_indices = @transform_9, window_bounds = array<i64: 128, 128>}]} {
    %c0 = arith.constant 0 : index
    %c0_0 = arith.constant 0 : index
    %0 = vector.load %arg1[%c0, %c0_0] : memref<128x32xbf16, #tpu.memory_space<vmem>>, vector<128x32xbf16>
    %c0_1 = arith.constant 0 : index
    %c0_2 = arith.constant 0 : index
    %1 = vector.load %arg2[%c0_1, %c0_2] : memref<32x128xbf16, #tpu.memory_space<vmem>>, vector<32x128xbf16>
    %cst = arith.constant dense<0.000000e+00> : vector<128x128xf32>
    %2 = tpu.matmul %0, %1, %cst {dimension_numbers = #tpu.dot_dimension_numbers<[1], [0], [0], [1], [0, 0, 1, 1], [], []>} : vector<128x32xbf16>, vector<32x128xbf16>, vector<128x128xf32> -> vector<128x128xf32>
    %c0_3 = arith.constant 0 : index
    %c0_4 = arith.constant 0 : index
    %3 = vector.load %arg3[%c0_3, %c0_4] : memref<1x128xf32, #tpu.memory_space<vmem>>, vector<1x128xf32>
    %4 = vector.broadcast %3 : vector<1x128xf32> to vector<128x128xf32>
    %5 = arith.addf %2, %4 : vector<128x128xf32>
    %cst_5 = arith.constant 0.000000e+00 : f32
    %6 = vector.broadcast %cst_5 : f32 to vector<128x128xf32>
    %7 = arith.maximumf %5, %6 : vector<128x128xf32>
    %8 = arith.truncf %7 : vector<128x128xf32> to vector<128x128xbf16>
    %c0_6 = arith.constant 0 : index
    %c0_7 = arith.constant 0 : index
    %9 = vector.load %arg4[%c0_6, %c0_7] : memref<128x128xbf16, #tpu.memory_space<vmem>>, vector<128x128xbf16>
    %cst_8 = arith.constant dense<0.000000e+00> : vector<128x128xf32>
    %10 = tpu.matmul %8, %9, %cst_8 {dimension_numbers = #tpu.dot_dimension_numbers<[1], [0], [0], [1], [0, 0, 1, 1], [], []>} : vector<128x128xbf16>, vector<128x128xbf16>, vector<128x128xf32> -> vector<128x128xf32>
    %c0_9 = arith.constant 0 : index
    %c0_10 = arith.constant 0 : index
    %11 = vector.load %arg5[%c0_9, %c0_10] : memref<1x128xf32, #tpu.memory_space<vmem>>, vector<1x128xf32>
    %12 = vector.broadcast %11 : vector<1x128xf32> to vector<128x128xf32>
    %13 = arith.addf %10, %12 : vector<128x128xf32>
    %c0_11 = arith.constant 0 : index
    %c0_12 = arith.constant 0 : index
    %14 = vector.load %arg6[%c0_11, %c0_12] : memref<128x128xbf16, #tpu.memory_space<vmem>>, vector<128x128xbf16>
    %cst_13 = arith.constant dense<0.000000e+00> : vector<128x128xf32>
    %15 = tpu.matmul %8, %14, %cst_13 {dimension_numbers = #tpu.dot_dimension_numbers<[1], [0], [0], [1], [0, 0, 1, 1], [], []>} : vector<128x128xbf16>, vector<128x128xbf16>, vector<128x128xf32> -> vector<128x128xf32>
    %c0_14 = arith.constant 0 : index
    %c0_15 = arith.constant 0 : index
    %16 = vector.load %arg7[%c0_14, %c0_15] : memref<1x128xf32, #tpu.memory_space<vmem>>, vector<1x128xf32>
    %17 = vector.broadcast %16 : vector<1x128xf32> to vector<128x128xf32>
    %18 = arith.addf %15, %17 : vector<128x128xf32>
    %cst_16 = arith.constant 5.000000e-01 : f32
    %19 = vector.broadcast %cst_16 : f32 to vector<128x128xf32>
    %20 = arith.mulf %19, %13 : vector<128x128xf32>
    %21 = math.tanh %20 : vector<128x128xf32>
    %cst_17 = arith.constant 5.000000e-01 : f32
    %22 = vector.broadcast %cst_17 : f32 to vector<128x128xf32>
    %23 = arith.mulf %22, %21 : vector<128x128xf32>
    %cst_18 = arith.constant 5.000000e-01 : f32
    %24 = vector.broadcast %cst_18 : f32 to vector<128x128xf32>
    %25 = arith.addf %23, %24 : vector<128x128xf32>
    %cst_19 = arith.constant 5.000000e-01 : f32
    %26 = vector.broadcast %cst_19 : f32 to vector<128x128xf32>
    %27 = arith.mulf %26, %18 : vector<128x128xf32>
    %28 = math.tanh %27 : vector<128x128xf32>
    %cst_20 = arith.constant 5.000000e-01 : f32
    %29 = vector.broadcast %cst_20 : f32 to vector<128x128xf32>
    %30 = arith.mulf %29, %28 : vector<128x128xf32>
    %cst_21 = arith.constant 5.000000e-01 : f32
    %31 = vector.broadcast %cst_21 : f32 to vector<128x128xf32>
    %32 = arith.addf %30, %31 : vector<128x128xf32>
    %33 = arith.subf %32, %7 : vector<128x128xf32>
    %34 = arith.mulf %25, %33 : vector<128x128xf32>
    %35 = arith.addf %7, %34 : vector<128x128xf32>
    %36 = arith.truncf %35 : vector<128x128xf32> to vector<128x128xbf16>
    %c0_22 = arith.constant 0 : index
    %c0_23 = arith.constant 0 : index
    %37 = vector.load %arg8[%c0_22, %c0_23] : memref<128x128xbf16, #tpu.memory_space<vmem>>, vector<128x128xbf16>
    %cst_24 = arith.constant dense<0.000000e+00> : vector<128x128xf32>
    %38 = tpu.matmul %36, %37, %cst_24 {dimension_numbers = #tpu.dot_dimension_numbers<[1], [0], [0], [1], [0, 0, 1, 1], [], []>} : vector<128x128xbf16>, vector<128x128xbf16>, vector<128x128xf32> -> vector<128x128xf32>
    %c0_25 = arith.constant 0 : index
    %c0_26 = arith.constant 0 : index
    %39 = vector.load %arg9[%c0_25, %c0_26] : memref<1x128xf32, #tpu.memory_space<vmem>>, vector<1x128xf32>
    %40 = vector.broadcast %39 : vector<1x128xf32> to vector<128x128xf32>
    %41 = arith.addf %38, %40 : vector<128x128xf32>
    %c0_27 = arith.constant 0 : index
    %c0_28 = arith.constant 0 : index
    %42 = vector.load %arg10[%c0_27, %c0_28] : memref<128x128xf32, #tpu.memory_space<vmem>>, vector<128x128xf32>
    tpu.vector_store %arg10[%c0_27, %c0_28], %41 {strides = array<i32>} : memref<128x128xf32, #tpu.memory_space<vmem>>, vector<128x128xf32>,
    return
  }
  func.func @transform_0(%arg0: i32) -> (i32, i32) {
    %c0_i32 = arith.constant 0 : i32
    %c0_i32_0 = arith.constant 0 : i32
    return %arg0, %c0_i32 : i32, i32
  }
  func.func @transform_1(%arg0: i32) -> (i32, i32) {
    %c0_i32 = arith.constant 0 : i32
    %c0_i32_0 = arith.constant 0 : i32
    %c0_i32_1 = arith.constant 0 : i32
    return %c0_i32, %c0_i32_0 : i32, i32
  }
  func.func @transform_2(%arg0: i32) -> (i32, i32) {
    %c0_i32 = arith.constant 0 : i32
    %c0_i32_0 = arith.constant 0 : i32
    %c0_i32_1 = arith.constant 0 : i32
    return %c0_i32, %c0_i32_0 : i32, i32
  }
  func.func @transform_3(%arg0: i32) -> (i32, i32) {
    %c0_i32 = arith.constant 0 : i32
    %c0_i32_0 = arith.constant 0 : i32
    %c0_i32_1 = arith.constant 0 : i32
    return %c0_i32, %c0_i32_0 : i32, i32
  }
  func.func @transform_4(%arg0: i32) -> (i32, i32) {
    %c0_i32 = arith.constant 0 : i32
    %c0_i32_0 = arith.constant 0 : i32
    %c0_i32_1 = arith.constant 0 : i32
    return %c0_i32, %c0_i32_0 : i32, i32
  }
  func.func @transform_5(%arg0: i32) -> (i32, i32) {
    %c0_i32 = arith.constant 0 : i32
    %c0_i32_0 = arith.constant 0 : i32
    %c0_i32_1 = arith.constant 0 : i32
    return %c0_i32, %c0_i32_0 : i32, i32
  }
  func.func @transform_6(%arg0: i32) -> (i32, i32) {
    %c0_i32 = arith.constant 0 : i32
    %c0_i32_0 = arith.constant 0 : i32
    %c0_i32_1 = arith.constant 0 : i32
    return %c0_i32, %c0_i32_0 : i32, i32
  }
  func.func @transform_7(%arg0: i32) -> (i32, i32) {
    %c0_i32 = arith.constant 0 : i32
    %c0_i32_0 = arith.constant 0 : i32
    %c0_i32_1 = arith.constant 0 : i32
    return %c0_i32, %c0_i32_0 : i32, i32
  }
  func.func @transform_8(%arg0: i32) -> (i32, i32) {
    %c0_i32 = arith.constant 0 : i32
    %c0_i32_0 = arith.constant 0 : i32
    %c0_i32_1 = arith.constant 0 : i32
    return %c0_i32, %c0_i32_0 : i32, i32
  }
  func.func @transform_9(%arg0: i32) -> (i32, i32) {
    %c0_i32 = arith.constant 0 : i32
    %c0_i32_0 = arith.constant 0 : i32
    return %arg0, %c0_i32 : i32, i32
  }
}

</mosaic_0001>

<bundles_post_ra>
// kernel: high_network_forward.1
= control target key start
LH: loop header
LB: loop body
LE: loop exit
PB: predicated region body
PF: predicated region fallthrough
CT: control target
= control target key end

     0   :  { %s1733_s30 = smov 0   ;;  %s2050_s0 = inlined_call_operand.vmem [shape: bf16[256,32], index: 0, kind: input, shape index: {}]   ;;  %s2051_s1 = inlined_call_operand.vmem [shape: bf16[32,128], index: 1, kind: input, shape index: {}]   ;;  %s2052_s2 = inlined_call_operand.vmem [shape: f32[1,128], index: 2, kind: input, shape index: {}]   ;;  %s2053_s3 = inlined_call_operand.vmem [shape: bf16[128,128], index: 3, kind: input, shape index: {}]   ;;  %s2054_s4 = inlined_call_operand.vmem [shape: f32[1,128], index: 4, kind: input, shape index: {}]   ;;  %s2055_s5 = inlined_call_operand.vmem [shape: bf16[128,128], index: 5, kind: input, shape index: {}]   ;;  %s2056_s6 = inlined_call_operand.vmem [shape: f32[1,128], index: 6, kind: input, shape index: {}]   ;;  %s2057_s7 = inlined_call_operand.vmem [shape: bf16[128,128], index: 7, kind: input, shape index: {}]   ;;  %s2058_s8 = inlined_call_operand.vmem [shape: f32[1,128], index: 8, kind: input, shape index: {}]   ;;  %s2059_s9 = inlined_call_operand.vmem [shape: f32[256,128], index: 9, kind: output, shape index: {}]  }
   0x1 LB: > { %s1322_s10 = sadd.s32 4294967295, %s1681_s30   ;;  %p1326_p0 = scmp.ge.s32.totalorder %s1681_s30, 1  ;;  %s1681_s30 = sphi %s1733_s30, %s19_s30  }
   0x2   : > { %p288_p1 = scmp.lt.s32.totalorder %s1681_s30, 3 }
   0x4   : > { %p289_p2 = pnand %p1326_p0, %p288_p1 }
   0x5   : > { %v1577_v0 = vld [vmem:[%s2051_s1] sm:$0xff] (!%p289_p2)   ;;  %s1327_s13 = sshll.u32 (!%p289_p2), %s1322_s10, 4  ;;  %v1578_v1 = vld [vmem:[%s2051_s1 + $0x8] sm:$0xff] (!%p289_p2)   ;;  %vm416_vm0 = vcmask (!%p289_p2), 261120   ;;  %v1591_v9 = vld [vmem:[%s2055_s5 + $0x10] sm:$0xff] (!%p289_p2)  }
   0x6   : > { %292 = sbr.rel (%p289_p2) target bundleno = 740 (0x2e4), region = 56  ;;  %p325_p3 = scmp.lt.s32.totalorder (!%p289_p2), %s1327_s13, 31  ;;  %1437 = vmatprep.subr.bf16.mxu0 (!%p289_p2), %v1577_v0  ;;  %v1588_v2 = vld [vmem:[%s2053_s3] sm:$0xff] (!%p289_p2)   ;;  %v1590_v4 = vld [vmem:[%s2053_s3 + $0x8] sm:$0xff] (!%p289_p2)   ;;  %v1592_v12 = vld [vmem:[%s2053_s3 + $0x10] sm:$0xff] (!%p289_p2)  }
   0x7   : > { %1438 = vmatpush3.bf16.msra.mxu0 (!%p289_p2), %v1577_v0  ;;  %v1587_v3 = vld [vmem:[%s2055_s5] sm:$0xff] (!%p289_p2)   ;;  %1457 = vmatprep.subr.bf16.mxu1 (!%p289_p2), %v1588_v2  ;;  %v1589_v5 = vld [vmem:[%s2055_s5 + $0x8] sm:$0xff] (!%p289_p2)   ;;  %v1593_v13 = vld [vmem:[%s2055_s5 + $0x18] sm:$0xff] (!%p289_p2)  }
   0x8   : > { %1439 = vmatprep.subr.bf16.mxu0 (!%p289_p2), %v1578_v1  ;;  %1458 = vmatpush3.bf16.msra.mxu1 (!%p289_p2), %v1588_v2  ;;  %v1594_v14 = vld [vmem:[%s2053_s3 + $0x18] sm:$0xff] (!%p289_p2)   ;;  %v1596_v15 = vld [vmem:[%s2053_s3 + $0x20] sm:$0xff] (!%p289_p2)   ;;  %v1597_v19 = vld [vmem:[%s2055_s5 + $0x28] sm:$0xff] (!%p289_p2)  }
   0x9   : > { %1459 = vmatprep.subr.bf16.mxu1 (!%p289_p2), %v1590_v4  ;;  %v1595_v17 = vld [vmem:[%s2055_s5 + $0x20] sm:$0xff] (!%p289_p2)   ;;  %v1598_v20 = vld [vmem:[%s2053_s3 + $0x28] sm:$0xff] (!%p289_p2)   ;;  %v1599_v22 = vld [vmem:[%s2055_s5 + $0x30] sm:$0xff] (!%p289_p2)  }
   0xa   : > { %v1600_v23 = vld [vmem:[%s2053_s3 + $0x30] sm:$0xff] (!%p289_p2)   ;;  %v1601_v24 = vld [vmem:[%s2055_s5 + $0x38] sm:$0xff] (!%p289_p2)   ;;  %v1331_v26 = vld [vmem:[%s2052_s2] ss:$0 sm:$0xff] (!%p289_p2) }
   0xb   : > { %1440 = vmatpush3.bf16.msra.mxu0 (!%p289_p2), %v1578_v1  ;;  %v1602_v25 = vld [vmem:[%s2053_s3 + $0x38] sm:$0xff] (!%p289_p2)  }
   0xc   : > { %1489 = vmatprep.subr.bf16.mxu0 (!%p289_p2), %v1587_v3  ;;  %1460 = vmatpush3.bf16.msra.mxu1 (!%p289_p2), %v1590_v4 }
   0xd   : > { %s2061_s13 = smov (!%p325_p3, %s1327_s13), 31  ;;  %1461 = vmatprep.subr.bf16.mxu1 %v1592_v12 }
   0xe   : > { %s1328_s20 = sshll.u32 %s2061_s13, 2  ;;  %s1330_s17 = sshll.u32 %s2061_s13, 3 }
   0xf   : > { %s1762_s25 = scalar_lea.vmem %s2050_s0, %s1328_s20  ;;  %s2029_s22 = scalar_lea.vmem %s2059_s9, %s1330_s17 }
  0x10   : > { %v1579_v6 = vld [vmem:[%s1762_s25] sm:$0xff]   ;;  %v1580_v7 = vld [vmem:[%s1762_s25 + $0x8] sm:$0xff]   ;;  %v1581_v8 = vld [vmem:[%s1762_s25 + $0x10] sm:$0xff]   ;;  %1462 = vmatpush3.bf16.msra.mxu1 %v1592_v12 }
  0x11   : > { %1441 = vmatprep.mubr.msk.bf16.mxu0 %vm416_vm0, %v1579_v6  ;;  %v1582_v10 = vld [vmem:[%s1762_s25 + $0x18] sm:$0xff]   ;;  %v1583_v11 = vld [vmem:[%s1762_s25 + $0x20] sm:$0xff]   ;;  %v1584_v16 = vld [vmem:[%s1762_s25 + $0x28] sm:$0xff]   ;;  %1463 = vmatprep.subr.bf16.mxu1 %v1594_v14 }
  0x12   : > { %1442 = vmatmul.mubr.msk.bf16.vlgmr.msra.gmra.mrb[0].mxu0 %vm416_vm0, %v1580_v7  ;;  %v1585_v18 = vld [vmem:[%s1762_s25 + $0x30] sm:$0xff]   ;;  %v1586_v21 = vld [vmem:[%s1762_s25 + $0x38] sm:$0xff]  }
  0x13   : > { %1445 = vmatprep.mubr.msk.bf16.mxu0 %vm416_vm0, %v1581_v8  ;;  %1490 = vmatpush3.bf16.msra.mxu0 %v1587_v3 }
  0x14   : > { %1491 = vmatprep.subr.bf16.mxu0 %v1589_v5  ;;  %1464 = vmatpush3.bf16.msra.mxu1 %v1594_v14 }
  0x15   : > { %1465 = vmatprep.subr.bf16.mxu1 %v1596_v15 }
  0x17   : > { %1492 = vmatpush3.bf16.msra.mxu0 %v1589_v5 }
  0x18   : > { %1493 = vmatprep.subr.bf16.mxu0 %v1591_v9  ;;  %1466 = vmatpush3.bf16.msra.mxu1 %v1596_v15 }
  0x19   : > { %1467 = vmatprep.subr.bf16.mxu1 %v1598_v20 }
  0x1a   : > { %1446 = vmatmul.mubr.msk.bf16.gmra.mrb[4].mxu0 %vm416_vm0, %v1582_v10 }
  0x1b   : > { %1449 = vmatprep.mubr.msk.bf16.mxu0 %vm416_vm0, %v1583_v11  ;;  %1494 = vmatpush3.bf16.msra.mxu0 %v1591_v9 }
  0x1c   : > { %1495 = vmatprep.subr.bf16.mxu0 %v1593_v13  ;;  %1468 = vmatpush3.bf16.msra.mxu1 %v1598_v20  ;;  %v1604_v20 = vld [vmem:[%s2057_s7 + $0x8] sm:$0xff]  }
  0x1d   : > { %1469 = vmatprep.subr.bf16.mxu1 %v1600_v23 }
  0x1f   : > { %1496 = vmatpush3.bf16.msra.mxu0 %v1593_v13 }
  0x20   : > { %1497 = vmatprep.subr.bf16.mxu0 %v1595_v17  ;;  %1470 = vmatpush3.bf16.msra.mxu1 %v1600_v23  ;;  %v1607_v23 = vld [vmem:[%s2057_s7 + $0x20] sm:$0xff]  }
  0x21   : > { %1471 = vmatprep.subr.bf16.mxu1 %v1602_v25 }
  0x22   : > { %1450 = vmatmul.mubr.msk.bf16.gmra.mrb[8].mxu0 %vm416_vm0, %v1584_v16 }
  0x23   : > { %1453 = vmatprep.mubr.msk.bf16.mxu0 %vm416_vm0, %v1585_v18  ;;  %1498 = vmatpush3.bf16.msra.mxu0 %v1595_v17 }
  0x24   : > { %1499 = vmatprep.subr.bf16.mxu0 %v1597_v19  ;;  %1472 = vmatpush3.bf16.msra.mxu1 %v1602_v25  ;;  %v1609_v25 = vld [vmem:[%s2057_s7 + $0x30] sm:$0xff]  }
  0x27   : > { %1500 = vmatpush3.bf16.msra.mxu0 %v1597_v19  ;;  %v1603_v19 = vld [vmem:[%s2057_s7] sm:$0xff]  }
  0x28   : > { %1501 = vmatprep.subr.bf16.mxu0 %v1599_v22  ;;  %1553 = vmatprep.subr.bf16.mxu1 %v1603_v19 }
  0x2a   : > { %1454 = vmatmul.mubr.msk.bf16.gmra.mrb[12].mxu0 %vm416_vm0, %v1586_v21  ;;  %v1605_v21 = vld [vmem:[%s2057_s7 + $0x10] sm:$0xff]  }
  0x2b   : > { %1502 = vmatpush3.bf16.msra.mxu0 %v1599_v22  ;;  %v1606_v22 = vld [vmem:[%s2057_s7 + $0x18] sm:$0xff]  }
  0x2c   : > { %1503 = vmatprep.subr.bf16.mxu0 %v1601_v24 }
  0x2f   : > { %1504 = vmatpush3.bf16.msra.mxu0 %v1601_v24  ;;  %v1608_v24 = vld [vmem:[%s2057_s7 + $0x28] sm:$0xff]  }
  0x30   : > { %1521 = vmatprep.subr.bf16.mxu0 %v1603_v19 }
  0xe5   : > { %v1443_v27 = vpop.f32.mrb[0].mxu0 }
  0xe6   : > { %v475_v28 = vpop.f32.mrb[1].mxu0  ;;  %v484_v31 = vadd.f32 %v1443_v27, %v1331_v26  ;;  %v1897_v27 = vld [vmem:[%s2054_s4] ss:$0 sm:$0xff] }
  0xe7   : > { %v476_v29 = vadd.f32 %v1331_v26, %v475_v28  ;;  %v1444_v30 = vpop.f32.mrb[2].mxu0  ;;  %v1902_v28 = vld [vmem:[%s2056_s6] ss:$0 sm:$0xff] }
  0xe8   : > { %v487_v32 = vadd.f32 %v1444_v30, %v1331_v26  ;;  %v478_v33 = vpop.f32.mrb[3].mxu0  ;;  %v1828_v38 = vmax.f32 %v484_v31, 0.0 }
  0xe9   : > { %v479_v34 = vadd.f32 %v1331_v26, %v478_v33  ;;  %v1824_v36 = vmax.f32 %v476_v29, 0.0 }
  0xea   : > { %v1822_v35 = vmax.f32 %v487_v32, 0.0 }
  0xeb   : > { %v1826_v37 = vmax.f32 %v479_v34, 0.0 }
  0xec   : > { %v555_v42 = vpack.c.bf16 %v1822_v35, %v1828_v38 }
  0xed   : > { %v1447_v39 = vpop.f32.mrb[4].mxu0  ;;  %v554_v40 = vpack.c.bf16 %v1826_v37, %v1824_v36 }
  0xee   : > { %v491_v41 = vpop.f32.mrb[5].mxu0  ;;  %v500_v45 = vadd.f32 %v1447_v39, %v1331_v26 }
  0xef   : > { %v492_v43 = vadd.f32 %v1331_v26, %v491_v41  ;;  %v1448_v44 = vpop.f32.mrb[6].mxu0  ;;  %1473 = vmatprep.mubr.bf16.mxu1 %v554_v40  ;;  %1505 = vmatprep.mubr.bf16.mxu0 %v554_v40 }
  0xf0   : > { %v503_v46 = vadd.f32 %v1448_v44, %v1331_v26  ;;  %v494_v47 = vpop.f32.mrb[7].mxu0  ;;  %1474 = vmatmul.mubr.bf16.vlgmr.msra.gmra.mrb[0].mxu1 %v555_v42  ;;  %1506 = vmatmul.mubr.bf16.vlgmr.msra.gmra.mrb[16].mxu0 %v555_v42  ;;  %v1840_v52 = vmax.f32 %v500_v45, 0.0 }
  0xf1   : > { %v495_v48 = vadd.f32 %v1331_v26, %v494_v47  ;;  %v1836_v50 = vmax.f32 %v492_v43, 0.0  ;;  %1522 = vmatpush3.bf16.msra.mxu0 %v1603_v19  ;;  %1561 = vmatpush3.bf16.msra.mxu1 %v1603_v19 }
  0xf2   : > { %v1834_v49 = vmax.f32 %v503_v46, 0.0  ;;  %1523 = vmatprep.subr.bf16.mxu0 %v1604_v20  ;;  %1554 = vmatprep.subr.bf16.mxu1 %v1604_v20 }
  0xf3   : > { %v1838_v51 = vmax.f32 %v495_v48, 0.0 }
  0xf4   : > { %v557_v56 = vpack.c.bf16 %v1834_v49, %v1840_v52 }
  0xf5   : > { %v1451_v53 = vpop.f32.mrb[8].mxu0  ;;  %v556_v54 = vpack.c.bf16 %v1838_v51, %v1836_v50  ;;  %1524 = vmatpush3.bf16.msra.mxu0 %v1604_v20  ;;  %1562 = vmatpush3.bf16.msra.mxu1 %v1604_v20 }
  0xf6   : > { %v507_v55 = vpop.f32.mrb[9].mxu0  ;;  %v516_v59 = vadd.f32 %v1451_v53, %v1331_v26  ;;  %1525 = vmatprep.subr.bf16.mxu0 %v1605_v21  ;;  %1555 = vmatprep.subr.bf16.mxu1 %v1605_v21 }
  0xf7   : > { %v508_v57 = vadd.f32 %v1331_v26, %v507_v55  ;;  %v1452_v58 = vpop.f32.mrb[10].mxu0  ;;  %1477 = vmatprep.mubr.bf16.mxu1 %v556_v54  ;;  %1509 = vmatprep.mubr.bf16.mxu0 %v556_v54 }
  0xf8   : > { %v519_v60 = vadd.f32 %v1452_v58, %v1331_v26  ;;  %v510_v61 = vpop.f32.mrb[11].mxu0  ;;  %1478 = vmatmul.mubr.bf16.gmra.mrb[4].mxu1 %v557_v56  ;;  %1510 = vmatmul.mubr.bf16.gmra.mrb[20].mxu0 %v557_v56  ;;  %v1852_v2 = vmax.f32 %v516_v59, 0.0 }
  0xf9   : > { %v511_v62 = vadd.f32 %v1331_v26, %v510_v61  ;;  %v1848_v0 = vmax.f32 %v508_v57, 0.0  ;;  %1526 = vmatpush3.bf16.msra.mxu0 %v1605_v21  ;;  %1563 = vmatpush3.bf16.msra.mxu1 %v1605_v21 }
  0xfa   : > { %v1846_v63 = vmax.f32 %v519_v60, 0.0  ;;  %1527 = vmatprep.subr.bf16.mxu0 %v1606_v22  ;;  %1556 = vmatprep.subr.bf16.mxu1 %v1606_v22 }
  0xfb   : > { %v1850_v1 = vmax.f32 %v511_v62, 0.0 }
  0xfc   : > { %v559_v6 = vpack.c.bf16 %v1846_v63, %v1852_v2 }
  0xfd   : > { %v1455_v3 = vpop.f32.mrb[12].mxu0  ;;  %v558_v4 = vpack.c.bf16 %v1850_v1, %v1848_v0  ;;  %1528 = vmatpush3.bf16.msra.mxu0 %v1606_v22  ;;  %1564 = vmatpush3.bf16.msra.mxu1 %v1606_v22 }
  0xfe   : > { %v523_v5 = vpop.f32.mrb[13].mxu0  ;;  %v532_v9 = vadd.f32 %v1455_v3, %v1331_v26  ;;  %1529 = vmatprep.subr.bf16.mxu0 %v1607_v23  ;;  %1557 = vmatprep.subr.bf16.mxu1 %v1607_v23 }
  0xff   : > { %v524_v7 = vadd.f32 %v1331_v26, %v523_v5  ;;  %v1456_v8 = vpop.f32.mrb[14].mxu0  ;;  %1481 = vmatprep.mubr.bf16.mxu1 %v558_v4  ;;  %1513 = vmatprep.mubr.bf16.mxu0 %v558_v4 }
 0x100   : > { %v535_v10 = vadd.f32 %v1456_v8, %v1331_v26  ;;  %v526_v11 = vpop.f32.mrb[15].mxu0  ;;  %1482 = vmatmul.mubr.bf16.gmra.mrb[8].mxu1 %v559_v6  ;;  %1514 = vmatmul.mubr.bf16.gmra.mrb[24].mxu0 %v559_v6  ;;  %v1864_v16 = vmax.f32 %v532_v9, 0.0 }
 0x101   : > { %v527_v12 = vadd.f32 %v1331_v26, %v526_v11  ;;  %v1860_v14 = vmax.f32 %v524_v7, 0.0  ;;  %1530 = vmatpush3.bf16.msra.mxu0 %v1607_v23  ;;  %1565 = vmatpush3.bf16.msra.mxu1 %v1607_v23  ;;  %v1610_v26 = vld [vmem:[%s2057_s7 + $0x38] sm:$0xff]  }
 0x102   : > { %v1858_v13 = vmax.f32 %v535_v10, 0.0  ;;  %1531 = vmatprep.subr.bf16.mxu0 %v1608_v24  ;;  %1558 = vmatprep.subr.bf16.mxu1 %v1608_v24 }
 0x103   : > { %v1862_v15 = vmax.f32 %v527_v12, 0.0 }
 0x104   : > { %v561_v18 = vpack.c.bf16 %v1858_v13, %v1864_v16 }
 0x105   : > { %v560_v17 = vpack.c.bf16 %v1862_v15, %v1860_v14  ;;  %1532 = vmatpush3.bf16.msra.mxu0 %v1608_v24  ;;  %1566 = vmatpush3.bf16.msra.mxu1 %v1608_v24 }
 0x106   : > { %1533 = vmatprep.subr.bf16.mxu0 %v1609_v25  ;;  %1559 = vmatprep.subr.bf16.mxu1 %v1609_v25 }
 0x107   : > { %1485 = vmatprep.mubr.bf16.mxu1 %v560_v17  ;;  %1517 = vmatprep.mubr.bf16.mxu0 %v560_v17 }
 0x108   : > { %1486 = vmatmul.mubr.bf16.gmra.mrb[12].mxu1 %v561_v18  ;;  %1518 = vmatmul.mubr.bf16.gmra.mrb[28].mxu0 %v561_v18 }
 0x109   : > { %1534 = vmatpush3.bf16.msra.mxu0 %v1609_v25  ;;  %1567 = vmatpush3.bf16.msra.mxu1 %v1609_v25 }
 0x10a   : > { %1535 = vmatprep.subr.bf16.mxu0 %v1610_v26  ;;  %1560 = vmatprep.subr.bf16.mxu1 %v1610_v26 }
 0x10d   : > { %1536 = vmatpush3.bf16.msra.mxu0 %v1610_v26  ;;  %1568 = vmatpush3.bf16.msra.mxu1 %v1610_v26 }
 0x1c3   : > { %v1475_v29 = vpop.f32.mrb[0].mxu1  ;;  %v1507_v30 = vpop.f32.mrb[16].mxu0 }
 0x1c4   : > { %v676_v31 = vadd.f32 %v1475_v29, %v1897_v27  ;;  %v844_v32 = vadd.f32 %v1507_v30, %v1902_v28  ;;  %v667_v33 = vpop.f32.mrb[1].mxu1  ;;  %v835_v34 = vpop.f32.mrb[17].mxu0 }
 0x1c5   : > { %v668_v39 = vadd.f32 %v1897_v27, %v667_v33  ;;  %v836_v40 = vadd.f32 %v1902_v28, %v835_v34  ;;  %v1476_v41 = vpop.f32.mrb[2].mxu1  ;;  %v1508_v42 = vpop.f32.mrb[18].mxu0 }
 0x1c6   : > { %v900_v43 = vmul.f32 0.5, %v676_v31  ;;  %v964_v44 = vmul.f32 0.5, %v844_v32  ;;  %v679_v45 = vadd.f32 %v1476_v41, %v1897_v27  ;;  %v847_v46 = vadd.f32 %v1508_v42, %v1902_v28  ;;  %v670_v47 = vpop.f32.mrb[3].mxu1  ;;  %v838_v48 = vpop.f32.mrb[19].mxu0 }
 0x1c7   : > { %v898_v53 = vmul.f32 0.5, %v668_v39  ;;  %v962_v54 = vmul.f32 0.5, %v836_v40  ;;  %v671_v55 = vadd.f32 %v1897_v27, %v670_v47  ;;  %v839_v56 = vadd.f32 %v1902_v28, %v838_v48 }
 0x1c8   : > { %1611 = vtanh.f32 %v900_v43  ;;  %v901_v57 = vmul.f32 0.5, %v679_v45  ;;  %v965_v58 = vmul.f32 0.5, %v847_v46 }
 0x1c9   : > { %1613 = vtanh.f32 %v964_v44  ;;  %v899_v59 = vmul.f32 0.5, %v671_v55  ;;  %v963_v60 = vmul.f32 0.5, %v839_v56 }
 0x1ca   : > { %1615 = vtanh.f32 %v898_v53 }
 0x1cb   : > { %1617 = vtanh.f32 %v962_v54  ;;  %v1479_v61 = vpop.f32.mrb[4].mxu1  ;;  %v1511_v62 = vpop.f32.mrb[20].mxu0 }
 0x1cc   : > { %1619 = vtanh.f32 %v901_v57  ;;  %v692_v3 = vadd.f32 %v1479_v61, %v1897_v27  ;;  %v860_v4 = vadd.f32 %v1511_v62, %v1902_v28  ;;  %v683_v5 = vpop.f32.mrb[5].mxu1  ;;  %v851_v6 = vpop.f32.mrb[21].mxu0 }
 0x1cd   : > { %1621 = vtanh.f32 %v965_v58  ;;  %v684_v7 = vadd.f32 %v1897_v27, %v683_v5  ;;  %v852_v8 = vadd.f32 %v1902_v28, %v851_v6  ;;  %v1480_v9 = vpop.f32.mrb[6].mxu1  ;;  %v1512_v10 = vpop.f32.mrb[22].mxu0 }
 0x1ce   : > { %1623 = vtanh.f32 %v899_v59  ;;  %v904_v11 = vmul.f32 0.5, %v692_v3  ;;  %v968_v12 = vmul.f32 0.5, %v860_v4  ;;  %v695_v17 = vadd.f32 %v1480_v9, %v1897_v27  ;;  %v686_v18 = vpop.f32.mrb[7].mxu1  ;;  %v854_v19 = vpop.f32.mrb[23].mxu0 }
 0x1cf   : > { %1625 = vtanh.f32 %v963_v60  ;;  %v902_v20 = vmul.f32 0.5, %v684_v7  ;;  %v966_v21 = vmul.f32 0.5, %v852_v8  ;;  %v863_v22 = vadd.f32 %v1512_v10, %v1902_v28 }
 0x1d0   : > { %1627 = vtanh.f32 %v904_v11  ;;  %v905_v23 = vmul.f32 0.5, %v695_v17  ;;  %v687_v24 = vadd.f32 %v1897_v27, %v686_v18  ;;  %v855_v25 = vadd.f32 %v1902_v28, %v854_v19 }
 0x1d1   : > { %1629 = vtanh.f32 %v968_v12  ;;  %v969_v26 = vmul.f32 0.5, %v863_v22 }
 0x1d2   : > { %v1612_v29 = vpop.eup %1611  ;;  %1631 = vtanh.f32 %v902_v20  ;;  %v903_v30 = vmul.f32 0.5, %v687_v24  ;;  %v967_v33 = vmul.f32 0.5, %v855_v25 }
 0x1d3   : > { %v1614_v31 = vpop.eup %1613  ;;  %v932_v32 = vmul.f32 0.5, %v1612_v29  ;;  %1633 = vtanh.f32 %v966_v21  ;;  %v1483_v34 = vpop.f32.mrb[8].mxu1 }
 0x1d4   : > { %v1515_v39 = vpop.f32.mrb[24].mxu0  ;;  %v1616_v40 = vpop.eup %1615  ;;  %v996_v41 = vmul.f32 0.5, %v1614_v31  ;;  %1635 = vtanh.f32 %v905_v23  ;;  %v708_v42 = vadd.f32 %v1483_v34, %v1897_v27 }
 0x1d5   : > { %v876_v43 = vadd.f32 %v1515_v39, %v1902_v28  ;;  %v699_v44 = vpop.f32.mrb[9].mxu1  ;;  %v867_v45 = vpop.f32.mrb[25].mxu0  ;;  %v930_v47 = vmul.f32 0.5, %v1616_v40  ;;  %1637 = vtanh.f32 %v969_v26  ;;  %v948_v62 = vadd.f32 0.5, %v932_v32 }
 0x1d6   : > { %v1618_v46 = vpop.eup %1617  ;;  %v700_v48 = vadd.f32 %v1897_v27, %v699_v44  ;;  %v1484_v53 = vpop.f32.mrb[10].mxu1  ;;  %v1012_v56 = vadd.f32 0.5, %v996_v41  ;;  %1639 = vtanh.f32 %v903_v30  ;;  %v908_v58 = vmul.f32 0.5, %v708_v42 }
 0x1d7   : > { %v1923_v54 = vpop.f32.mrb[26].mxu0  ;;  %v1620_v55 = vpop.eup %1619  ;;  %v994_v57 = vmul.f32 0.5, %v1618_v46  ;;  %1641 = vtanh.f32 %v967_v33  ;;  %v972_v4 = vmul.f32 0.5, %v876_v43  ;;  %v1932_v18 = vadd.f32 0.5, %v930_v47 }
 0x1d8   : > { %v1925_v59 = vpop.f32.mrb[11].mxu1  ;;  %v1927_v60 = vpop.f32.mrb[27].mxu0  ;;  %v933_v3 = vmul.f32 0.5, %v1620_v55  ;;  %v1028_v6 = vsub.f32 %v1012_v56, %v1828_v38  ;;  %1643 = vtanh.f32 %v908_v58  ;;  %v906_v11 = vmul.f32 0.5, %v700_v48 }
 0x1d9   : > { %v1622_v61 = vpop.eup %1621  ;;  %v1930_v7 = vadd.f32 0.5, %v994_v57  ;;  %1645 = vtanh.f32 %v972_v4  ;;  %v868_v24 = vadd.f32 %v1902_v28, %v867_v45  ;;  %v711_v44 = vadd.f32 %v1484_v53, %v1897_v27 }
 0x1da   : > { %v1624_v5 = vpop.eup %1623  ;;  %v997_v8 = vmul.f32 0.5, %v1622_v61  ;;  %v1044_v17 = vmul.f32 %v1028_v6, %v948_v62  ;;  %v949_v22 = vadd.f32 0.5, %v933_v3  ;;  %1647 = vtanh.f32 %v906_v11 }
 0x1db   : > { %v1626_v9 = vpop.eup %1625  ;;  %v931_v10 = vmul.f32 0.5, %v1624_v5  ;;  %v1935_v25 = vpop.f32.mrb[12].mxu1  ;;  %v1026_v30 = vsub.f32 %v1930_v7, %v1824_v36  ;;  %v970_v43 = vmul.f32 0.5, %v868_v24  ;;  %v909_v5 = vmul.f32 0.5, %v711_v44 }
 0x1dc   : > { %v1628_v12 = vpop.eup %1627  ;;  %v1013_v19 = vadd.f32 0.5, %v997_v8  ;;  %v995_v20 = vmul.f32 0.5, %v1626_v9  ;;  %v1937_v26 = vpop.f32.mrb[28].mxu0  ;;  %v1950_v48 = vadd.f32 %v1044_v17, %v1828_v38 }
 0x1dd   : > { %v1630_v21 = vpop.eup %1629  ;;  %v936_v23 = vmul.f32 0.5, %v1628_v12  ;;  %v715_v34 = vpop.f32.mrb[13].mxu1  ;;  %v1946_v41 = vadd.f32 0.5, %v931_v10  ;;  %1649 = vtanh.f32 %v970_v43 }
 0x1de   : > { %v1632_v29 = vpop.eup %1631  ;;  %v1029_v31 = vsub.f32 %v1013_v19, %v1822_v35  ;;  %v1942_v32 = vadd.f32 0.5, %v995_v20  ;;  %v1000_v33 = vmul.f32 0.5, %v1630_v21  ;;  %v1944_v39 = vpop.f32.mrb[29].mxu0  ;;  %v879_v19 = vadd.f32 %v1923_v54, %v1902_v28 }
 0x1df   : > { %v1634_v40 = vpop.eup %1633  ;;  %v934_v42 = vmul.f32 0.5, %v1632_v29  ;;  %v1488_v45 = vpop.f32.mrb[14].mxu1  ;;  %v952_v3 = vadd.f32 0.5, %v936_v23  ;;  %1651 = vtanh.f32 %v909_v5  ;;  %v724_v5 = vadd.f32 %v1935_v25, %v1897_v27 }
 0x1e0   : > { %v1520_v46 = vpop.f32.mrb[30].mxu0  ;;  %v1636_v47 = vpop.eup %1635  ;;  %v1045_v55 = vmul.f32 %v1029_v31, %v949_v22  ;;  %v1016_v56 = vadd.f32 0.5, %v1000_v33  ;;  %v998_v57 = vmul.f32 0.5, %v1634_v40  ;;  %v1027_v53 = vsub.f32 %v1942_v32, %v1826_v37 }
 0x1e1   : > { %v718_v58 = vpop.f32.mrb[15].mxu1  ;;  %v886_v61 = vpop.f32.mrb[31].mxu0  ;;  %v937_v4 = vmul.f32 0.5, %v1636_v47  ;;  %v1960_v12 = vadd.f32 0.5, %v934_v42  ;;  %v973_v33 = vmul.f32 0.5, %v879_v19  ;;  %v703_v40 = vadd.f32 %v1897_v27, %v1925_v59 }
 0x1e2   : > { %v1638_v62 = vpop.eup %1637  ;;  %v1032_v8 = vsub.f32 %v1016_v56, %v1840_v52  ;;  %v1955_v9 = vadd.f32 0.5, %v998_v57  ;;  %v1958_v11 = vadd.f32 %v1045_v55, %v1822_v35  ;;  %v871_v56 = vadd.f32 %v1902_v28, %v1927_v60 }
 0x1e3   : > { %v1640_v6 = vpop.eup %1639  ;;  %v1001_v38 = vmul.f32 0.5, %v1638_v62  ;;  %v953_v22 = vadd.f32 0.5, %v937_v4  ;;  %1653 = vtanh.f32 %v973_v33  ;;  %v907_v55 = vmul.f32 0.5, %v703_v40 }
 0x1e4   : > { %v1642_v10 = vpop.eup %1641  ;;  %v935_v17 = vmul.f32 0.5, %v1640_v6  ;;  %v1048_v21 = vmul.f32 %v1032_v8, %v952_v3  ;;  %v1030_v35 = vsub.f32 %v1955_v9, %v1836_v50  ;;  %v971_v4 = vmul.f32 0.5, %v871_v56 }
 0x1e5   : > { %v1644_v20 = vpop.eup %1643  ;;  %v1017_v23 = vadd.f32 0.5, %v1001_v38  ;;  %v999_v24 = vmul.f32 0.5, %v1642_v10  ;;  %1655 = vtanh.f32 %v907_v55  ;;  %v892_v6 = vadd.f32 %v1937_v26, %v1902_v28 }
 0x1e6   : > { %v1646_v29 = vpop.eup %1645  ;;  %v940_v31 = vmul.f32 0.5, %v1644_v20  ;;  %v951_v47 = vadd.f32 0.5, %v935_v17  ;;  %v1972_v57 = vadd.f32 %v1048_v21, %v1840_v52  ;;  %v716_v52 = vadd.f32 %v1897_v27, %v715_v34 }
 0x1e7   : > { %v1033_v42 = vsub.f32 %v1017_v23, %v1834_v49  ;;  %v1015_v43 = vadd.f32 0.5, %v999_v24  ;;  %v1004_v44 = vmul.f32 0.5, %v1646_v29  ;;  %v1648_v54 = vpop.eup %1647  ;;  %1657 = vtanh.f32 %v971_v4 }
 0x1e8   : > { %v956_v3 = vadd.f32 0.5, %v940_v31  ;;  %v938_v60 = vmul.f32 0.5, %v1648_v54  ;;  %v1650_v38 = vpop.eup %1649  ;;  %v912_v10 = vmul.f32 0.5, %v724_v5  ;;  %v976_v17 = vmul.f32 0.5, %v892_v6 }
 0x1e9   : > { %v1049_v62 = vmul.f32 %v1033_v42, %v953_v22  ;;  %v1031_v59 = vsub.f32 %v1015_v43, %v1838_v51  ;;  %v1020_v9 = vadd.f32 0.5, %v1004_v44  ;;  %v884_v19 = vadd.f32 %v1902_v28, %v1944_v39  ;;  %v1652_v31 = vpop.eup %1651 }
 0x1ea   : > { %v1002_v20 = vmul.f32 0.5, %v1650_v38  ;;  %v910_v21 = vmul.f32 0.5, %v716_v52  ;;  %v727_v25 = vadd.f32 %v1488_v45, %v1897_v27  ;;  %v895_v26 = vadd.f32 %v1520_v46, %v1902_v28 }
 0x1eb   : > { %v1980_v8 = vadd.f32 %v1049_v62, %v1834_v49  ;;  %1659 = vtanh.f32 %v912_v10  ;;  %v974_v49 = vmul.f32 0.5, %v884_v19  ;;  %v719_v22 = vadd.f32 %v1897_v27, %v718_v58 }
 0x1ec   : > { %v887_v23 = vadd.f32 %v1902_v28, %v886_v61  ;;  %v1036_v34 = vsub.f32 %v1020_v9, %v1852_v2  ;;  %v1018_v24 = vadd.f32 0.5, %v1002_v20  ;;  %1661 = vtanh.f32 %v976_v17 }
 0x1ed   : > { %v913_v29 = vmul.f32 0.5, %v727_v25  ;;  %v954_v33 = vadd.f32 0.5, %v938_v60  ;;  %1663 = vtanh.f32 %v910_v21  ;;  %v977_v39 = vmul.f32 0.5, %v895_v26  ;;  %v1654_v28 = vpop.eup %1653 }
 0x1ee   : > { %v911_v40 = vmul.f32 0.5, %v719_v22  ;;  %v1034_v45 = vsub.f32 %v1018_v24, %v1848_v0  ;;  %1665 = vtanh.f32 %v974_v49  ;;  %v975_v46 = vmul.f32 0.5, %v887_v23 }
 0x1ef   : > { %v1042_v27 = vmul.f32 %v1026_v30, %v1932_v18  ;;  %1667 = vtanh.f32 %v913_v29  ;;  %v1043_v58 = vmul.f32 %v1027_v53, %v1946_v41  ;;  %v1075_v61 = vpack.c.bf16 %v1958_v11, %v1950_v48  ;;  %v1656_v55 = vpop.eup %1655 }
 0x1f0   : > { %v1046_v42 = vmul.f32 %v1030_v35, %v1960_v12  ;;  %v941_v43 = vmul.f32 0.5, %v1652_v31  ;;  %v1005_v44 = vmul.f32 0.5, %v1654_v28  ;;  %1669 = vtanh.f32 %v977_v39 }
 0x1f1   : > { %v1047_v54 = vmul.f32 %v1031_v59, %v951_v47  ;;  %1671 = vtanh.f32 %v911_v40  ;;  %v1058_v7 = vadd.f32 %v1042_v27, %v1824_v36  ;;  %v1059_v18 = vadd.f32 %v1043_v58, %v1826_v37  ;;  %v1658_v53 = vpop.eup %1657 }
 0x1f2   : > { %v1077_v30 = vpack.c.bf16 %v1980_v8, %v1972_v57  ;;  %v1021_v32 = vadd.f32 0.5, %v1005_v44  ;;  %1673 = vtanh.f32 %v975_v46  ;;  %v1062_v41 = vadd.f32 %v1046_v42, %v1836_v50 }
 0x1f3   : > { %v1063_v48 = vadd.f32 %v1047_v54, %v1838_v51  ;;  %v939_v11 = vmul.f32 0.5, %v1656_v55  ;;  %v1074_v12 = vpack.c.bf16 %v1059_v18, %v1058_v7  ;;  %v1050_v35 = vmul.f32 %v1034_v45, %v954_v33 }
 0x1f4   : > { %v1052_v47 = vmul.f32 %v1036_v34, %v956_v3  ;;  %v957_v56 = vadd.f32 0.5, %v941_v43  ;;  %v1037_v62 = vsub.f32 %v1021_v32, %v1846_v63  ;;  %v1003_v36 = vmul.f32 0.5, %v1658_v53 }
 0x1f5   : > { %v1076_v59 = vpack.c.bf16 %v1063_v48, %v1062_v41  ;;  %v1660_v37 = vpop.eup %1659  ;;  %1537 = vmatprep.mubr.bf16.mxu0 %v1074_v12  ;;  %v955_v51 = vadd.f32 0.5, %v939_v11  ;;  %v1368_v41 = vld [vmem:[%s2058_s8] ss:$0 sm:$0xff] }
 0x1f6   : > { %v1662_v4 = vpop.eup %1661  ;;  %v1019_v57 = vadd.f32 0.5, %v1003_v36  ;;  %v944_v5 = vmul.f32 0.5, %v1660_v37  ;;  %1538 = vmatmul.mubr.bf16.vlgmr.msra.gmra.mrb[32].mxu0 %v1075_v61  ;;  %v1053_v50 = vmul.f32 %v1037_v62, %v957_v56  ;;  %v1068_v52 = vadd.f32 %v1052_v47, %v1852_v2 }
 0x1f7   : > { %1541 = vmatprep.mubr.bf16.mxu1 %v1076_v59  ;;  %v1664_v6 = vpop.eup %1663  ;;  %v1008_v8 = vmul.f32 0.5, %v1662_v4  ;;  %v1066_v2 = vadd.f32 %v1050_v35, %v1848_v0 }
 0x1f8   : > { %1542 = vmatmul.mubr.bf16.vlgmr.msra.gmra.mrb[16].mxu1 %v1077_v30  ;;  %v1666_v9 = vpop.eup %1665  ;;  %v1035_v3 = vsub.f32 %v1019_v57, %v1850_v1  ;;  %v942_v60 = vmul.f32 0.5, %v1664_v6  ;;  %v1069_v38 = vadd.f32 %v1053_v50, %v1846_v63  ;;  %v960_v21 = vadd.f32 0.5, %v944_v5 }
 0x1f9   : > { %v1668_v10 = vpop.eup %1667  ;;  %v1024_v17 = vadd.f32 0.5, %v1008_v8  ;;  %v1006_v19 = vmul.f32 0.5, %v1666_v9 }
 0x1fa   : > { %v1670_v20 = vpop.eup %1669  ;;  %v1051_v25 = vmul.f32 %v1035_v3, %v955_v51  ;;  %v1079_v26 = vpack.c.bf16 %v1069_v38, %v1068_v52  ;;  %v945_v34 = vmul.f32 0.5, %v1668_v10  ;;  %v958_v31 = vadd.f32 0.5, %v942_v60 }
 0x1fb   : > { %v1672_v49 = vpop.eup %1671  ;;  %v1040_v22 = vsub.f32 %v1024_v17, %v1864_v16  ;;  %v1022_v23 = vadd.f32 0.5, %v1006_v19  ;;  %v1009_v24 = vmul.f32 0.5, %v1670_v20 }
 0x1fc   : > { %v1674_v29 = vpop.eup %1673  ;;  %v943_v33 = vmul.f32 0.5, %v1672_v49  ;;  %v1067_v63 = vadd.f32 %v1051_v25, %v1850_v1  ;;  %v961_v28 = vadd.f32 0.5, %v945_v34 }
 0x1fd   : > { %v1038_v39 = vsub.f32 %v1022_v23, %v1860_v14  ;;  %v1025_v40 = vadd.f32 0.5, %v1009_v24  ;;  %v1007_v45 = vmul.f32 0.5, %v1674_v29  ;;  %v1056_v46 = vmul.f32 %v1040_v22, %v960_v21 }
 0x1fe   : > { %v1078_v27 = vpack.c.bf16 %v1067_v63, %v1066_v2  ;;  %v959_v43 = vadd.f32 0.5, %v943_v33 }
 0x1ff   : > { %v1041_v58 = vsub.f32 %v1025_v40, %v1858_v13  ;;  %v1023_v61 = vadd.f32 0.5, %v1007_v45  ;;  %v1054_v42 = vmul.f32 %v1038_v39, %v958_v31  ;;  %v1072_v1 = vadd.f32 %v1056_v46, %v1864_v16 }
 0x200   : > { %1545 = vmatprep.mubr.bf16.mxu1 %v1078_v27 }
 0x201   : > { %v1039_v44 = vsub.f32 %v1023_v61, %v1862_v15  ;;  %1546 = vmatmul.mubr.bf16.gmra.mrb[20].mxu1 %v1079_v26  ;;  %v1057_v0 = vmul.f32 %v1041_v58, %v961_v28  ;;  %v1070_v7 = vadd.f32 %v1054_v42, %v1860_v14 }
 0x203   : > { %v1055_v54 = vmul.f32 %v1039_v44, %v959_v43  ;;  %v1073_v55 = vadd.f32 %v1057_v0, %v1858_v13 }
 0x205   : > { %v1071_v18 = vadd.f32 %v1055_v54, %v1862_v15  ;;  %v1081_v30 = vpack.c.bf16 %v1073_v55, %v1072_v1 }
 0x207   : > { %v1080_v32 = vpack.c.bf16 %v1071_v18, %v1070_v7 }
 0x209   : > { %1549 = vmatprep.mubr.bf16.mxu1 %v1080_v32 }
 0x20a   : > { %1550 = vmatmul.mubr.bf16.gmra.mrb[24].mxu1 %v1081_v30 }
 0x2c9   : > { %v1539_v13 = vpop.f32.mrb[32].mxu0 }
 0x2ca   : > { %v1196_v14 = vadd.f32 %v1539_v13, %v1368_v41  ;;  %v1187_v15 = vpop.f32.mrb[33].mxu0 }
 0x2cb   : > { %v1543_v16 = vpop.f32.mrb[16].mxu1  ;;  %v1188_v48 = vadd.f32 %v1368_v41, %v1187_v15  ;;  %v1540_v53 = vpop.f32.mrb[34].mxu0 }
 0x2cc   : > { %v1212_v11 = vadd.f32 %v1543_v16, %v1368_v41  ;;  %v1203_v12 = vpop.f32.mrb[17].mxu1  ;;  %1252 = vst [vmem:[%s2029_s22 + $0x10] sm:$0xff] %v1196_v14  ;;  %v1199_v35 = vadd.f32 %v1540_v53, %v1368_v41  ;;  %v1190_v47 = vpop.f32.mrb[35].mxu0 }
 0x2cd   : > { %v1204_v56 = vadd.f32 %v1368_v41, %v1203_v12  ;;  %v1544_v62 = vpop.f32.mrb[18].mxu1  ;;  %1250 = vst [vmem:[%s2029_s22] sm:$0xff] %v1188_v48  ;;  %v1191_v36 = vadd.f32 %v1368_v41, %v1190_v47 }
 0x2ce   : > { %1256 = vst [vmem:[%s2029_s22 + $0x30] sm:$0xff] %v1212_v11  ;;  %v1215_v59 = vadd.f32 %v1544_v62, %v1368_v41  ;;  %v1206_v37 = vpop.f32.mrb[19].mxu1  ;;  %1253 = vst [vmem:[%s2029_s22 + $0x18] sm:$0xff] %v1199_v35 }
 0x2cf   : > { %1254 = vst [vmem:[%s2029_s22 + $0x20] sm:$0xff] %v1204_v56  ;;  %v1207_v4 = vadd.f32 %v1368_v41, %v1206_v37  ;;  %1251 = vst [vmem:[%s2029_s22 + $0x8] sm:$0xff] %v1191_v36 }
 0x2d0   : > { %1257 = vst [vmem:[%s2029_s22 + $0x38] sm:$0xff] %v1215_v59 }
 0x2d1   : > { %1255 = vst [vmem:[%s2029_s22 + $0x28] sm:$0xff] %v1207_v4 }
 0x2d4   : > { %v1547_v57 = vpop.f32.mrb[20].mxu1 }
 0x2d5   : > { %v1228_v5 = vadd.f32 %v1547_v57, %v1368_v41  ;;  %v1219_v50 = vpop.f32.mrb[21].mxu1 }
 0x2d6   : > { %v1220_v6 = vadd.f32 %v1368_v41, %v1219_v50  ;;  %v1548_v51 = vpop.f32.mrb[22].mxu1 }
 0x2d7   : > { %1260 = vst [vmem:[%s2029_s22 + $0x50] sm:$0xff] %v1228_v5  ;;  %v1231_v8 = vadd.f32 %v1548_v51, %v1368_v41  ;;  %v1222_v9 = vpop.f32.mrb[23].mxu1 }
 0x2d8   : > { %1258 = vst [vmem:[%s2029_s22 + $0x40] sm:$0xff] %v1220_v6  ;;  %v1223_v3 = vadd.f32 %v1368_v41, %v1222_v9 }
 0x2d9   : > { %1261 = vst [vmem:[%s2029_s22 + $0x58] sm:$0xff] %v1231_v8 }
 0x2da   : > { %1259 = vst [vmem:[%s2029_s22 + $0x48] sm:$0xff] %v1223_v3 }
 0x2dd   : > { %v1551_v60 = vpop.f32.mrb[24].mxu1 }
 0x2de   : > { %v1244_v52 = vadd.f32 %v1551_v60, %v1368_v41  ;;  %v1235_v38 = vpop.f32.mrb[25].mxu1 }
 0x2df   : > { %v1236_v10 = vadd.f32 %v1368_v41, %v1235_v38  ;;  %v1552_v17 = vpop.f32.mrb[26].mxu1 }
 0x2e0   : > { %1264 = vst [vmem:[%s2029_s22 + $0x70] sm:$0xff] %v1244_v52  ;;  %v1247_v19 = vadd.f32 %v1552_v17, %v1368_v41  ;;  %v1238_v20 = vpop.f32.mrb[27].mxu1 }
 0x2e1   : > { %1262 = vst [vmem:[%s2029_s22 + $0x60] sm:$0xff] %v1236_v10  ;;  %v1239_v21 = vadd.f32 %v1368_v41, %v1238_v20 }
 0x2e2   : > { %1265 = vst [vmem:[%s2029_s22 + $0x78] sm:$0xff] %v1247_v19 }
 0x2e3   : > { %1263 = vst [vmem:[%s2029_s22 + $0x68] sm:$0xff] %v1239_v21 }
 0x2e4 PF: > { %s19_s30 = sadd.s32 1, %s1681_s30  }
 0x2e5   : > { %p16_p4 = scmp.ge.s32.totalorder %s19_s30, 4  }
 0x2e7   :  { %18 = sbr.rel (!%p16_p4) target bundleno = 1 (0x1), region = 86 }

</bundles_post_ra>
